<compile_context>
chip_gen: v7x
topology: tpu7x:2x2x1
jax: 0.10.0
libtpu: 0.0.40
codegen_flags: <defaults>
</compile_context>

<pallas_src>
import jax
import jax.numpy as jnp
from jax.experimental import pallas as pl
from jax.experimental.pallas import tpu as pltpu

DATA_DIM = 2          # fixed in the PyTorch module
EMB_DIM = 32          # flags.emb_dim
LATENT_DIM = 2        # flags.class_dim (must be <= data_dim)
HEAD_DIM = 2 * LATENT_DIM
LEAKY_SLOPE = 0.01    # nn.LeakyReLU default negative_slope
MAX_TILE_B = 2048     # rows per grid step (sized for v5e's 16 MiB scoped VMEM)


def _round_up(x, m):
    return ((x + m - 1) // m) * m


def _encgm_kernel(x_ref, w1_ref, b1_ref, wh_ref, bh_ref, out_ref):
    x = x_ref[...]                      # (tb, 2) f32
    w1 = w1_ref[...]                    # (2, EMB_DIM)
    # Layer 1: contraction K == 2 -> two VPU broadcast-FMAs (skip the MXU).
    h = x[:, 0:1] * w1[0:1, :] + x[:, 1:2] * w1[1:2, :] + b1_ref[...]
    h = jnp.where(h > 0, h, LEAKY_SLOPE * h)            # LeakyReLU
    # Fused mu|log_var head: one MXU matmul, one narrow output slab.
    out_ref[...] = (jnp.dot(h, wh_ref[...], preferred_element_type=jnp.float32)
                    + bh_ref[...])


def prepare_params(params):
    """One-time packing (hoisted out of the hot path): fuse mu/var heads."""
    return {
        "w1": params["w1"].astype(jnp.float32),                          # (2, 32)
        "b1": params["b1"].reshape(1, EMB_DIM).astype(jnp.float32),      # (1, 32)
        "wh": jnp.concatenate([params["wmu"], params["wvar"]],
                              axis=1).astype(jnp.float32),               # (32, 4)
        "bh": jnp.concatenate([params["bmu"], params["bvar"]]
                              ).reshape(1, HEAD_DIM).astype(jnp.float32),  # (1, 4)
    }


@jax.jit
def _encgm_call(x, w1, b1, wh, bh):
    B = x.shape[0]
    B8 = _round_up(max(B, 8), 8)
    if B8 <= MAX_TILE_B:
        tb, B_p = B8, B8
    else:
        tb = MAX_TILE_B
        B_p = _round_up(B8, tb)
    if B_p != B:
        x = jnp.zeros((B_p, DATA_DIM), jnp.float32).at[:B, :].set(x)

    flops = 2 * B_p * (DATA_DIM * EMB_DIM + EMB_DIM * HEAD_DIM)
    bytes_accessed = 4 * (B_p * DATA_DIM + B_p * HEAD_DIM
                          + DATA_DIM * EMB_DIM + EMB_DIM
                          + EMB_DIM * HEAD_DIM + HEAD_DIM)

    out = pl.pallas_call(
        _encgm_kernel,
        out_shape=jax.ShapeDtypeStruct((B_p, HEAD_DIM), jnp.float32),
        grid=(B_p // tb,),
        in_specs=[
            pl.BlockSpec((tb, DATA_DIM), lambda i: (i, 0)),        # x tiles
            pl.BlockSpec((DATA_DIM, EMB_DIM), lambda i: (0, 0)),   # weights stay
            pl.BlockSpec((1, EMB_DIM), lambda i: (0, 0)),          #   resident
            pl.BlockSpec((EMB_DIM, HEAD_DIM), lambda i: (0, 0)),
            pl.BlockSpec((1, HEAD_DIM), lambda i: (0, 0)),
        ],
        out_specs=pl.BlockSpec((tb, HEAD_DIM), lambda i: (i, 0)),
        compiler_params=pltpu.CompilerParams(
            dimension_semantics=("parallel",)),
        cost_estimate=pl.CostEstimate(
            flops=flops, transcendentals=0, bytes_accessed=bytes_accessed),
    )(x, w1, b1, wh, bh)

    return out[:B, :LATENT_DIM], out[:B, LATENT_DIM:HEAD_DIM]


def encgm_forward(x, prepared):
    """x: (B, DATA_DIM) f32; prepared: output of prepare_params()."""
    mu, log_var = _encgm_call(x, prepared["w1"], prepared["b1"],
                              prepared["wh"], prepared["bh"])
    return (None, None, mu, log_var)


def init_params(key):
    """Deterministic PyTorch-Linear-style init (uniform +/- 1/sqrt(fan_in))."""
    ks = jax.random.split(key, 6)

    def linear(kw, kb, fan_in, fan_out):
        bound = 1.0 / jnp.sqrt(float(fan_in))
        w = jax.random.uniform(kw, (fan_in, fan_out), jnp.float32, -bound, bound)
        b = jax.random.uniform(kb, (fan_out,), jnp.float32, -bound, bound)
        return w, b

    w1, b1 = linear(ks[0], ks[1], DATA_DIM, EMB_DIM)
    wmu, bmu = linear(ks[2], ks[3], EMB_DIM, LATENT_DIM)
    wvar, bvar = linear(ks[4], ks[5], EMB_DIM, LATENT_DIM)
    return {"w1": w1, "b1": b1, "wmu": wmu, "bmu": bmu, "wvar": wvar, "bvar": bvar}


def reference_forward(x, p):
    h = x @ p["w1"] + p["b1"]
    h = jnp.where(h > 0, h, LEAKY_SLOPE * h)
    return h @ p["wmu"] + p["bmu"], h @ p["wvar"] + p["bvar"]


if __name__ == "__main__":
    key = jax.random.PRNGKey(0)
    k_x, k_x2, k_p = jax.random.split(key, 3)

    params = init_params(k_p)
    prepared = prepare_params(params)   # done once, reused across calls

    # Small, tile-aligned batch.
    B = 8
    x = jax.random.normal(k_x, (B, DATA_DIM), jnp.float32)
    none1, none2, mu, log_var = encgm_forward(x, prepared)
    jax.block_until_ready((mu, log_var))
    mu_ref, lv_ref = reference_forward(x, params)
    assert mu.shape == (B, LATENT_DIM) and log_var.shape == (B, LATENT_DIM)
    assert jnp.allclose(mu, mu_ref, atol=1e-5, rtol=1e-5)
    assert jnp.allclose(log_var, lv_ref, atol=1e-5, rtol=1e-5)
    assert none1 is None and none2 is None

    # Ragged batch exercising the row-padding path.
    B2 = 37
    x2 = jax.random.normal(k_x2, (B2, DATA_DIM), jnp.float32)
    _, _, mu2, lv2 = encgm_forward(x2, prepared)
    jax.block_until_ready((mu2, lv2))
    mu2_ref, lv2_ref = reference_forward(x2, params)
    assert mu2.shape == (B2, LATENT_DIM) and lv2.shape == (B2, LATENT_DIM)
    assert jnp.allclose(mu2, mu2_ref, atol=1e-5, rtol=1e-5)
    assert jnp.allclose(lv2, lv2_ref, atol=1e-5, rtol=1e-5)

    print("KERNEL_OK")
</pallas_src>

<mosaic_0001>
module attributes {stable_mosaic.version = 11 : i64} {
  func.func @_encgm_kernel(%arg0: i32, %arg1: memref<8x2xf32, #tpu.memory_space<vmem>>, %arg2: memref<2x32xf32, #tpu.memory_space<vmem>>, %arg3: memref<1x32xf32, #tpu.memory_space<vmem>>, %arg4: memref<32x4xf32, #tpu.memory_space<vmem>>, %arg5: memref<1x4xf32, #tpu.memory_space<vmem>>, %arg6: memref<8x4xf32, #tpu.memory_space<vmem>>) attributes {dimension_semantics = [#tpu.dimension_semantics<parallel>], iteration_bounds = array<i64: 1>, scalar_prefetch = 0 : i64, scratch_operands = 0 : i64, tpu.core_type = #tpu.core_type<tc>, window_params = [{transform_indices = @transform_0, window_bounds = array<i64: 8, 2>}, {pipeline_mode = #tpu.pipeline_mode<synchronous>, transform_indices = @transform_1, window_bounds = array<i64: 2, 32>}, {pipeline_mode = #tpu.pipeline_mode<synchronous>, transform_indices = @transform_2, window_bounds = array<i64: 1, 32>}, {pipeline_mode = #tpu.pipeline_mode<synchronous>, transform_indices = @transform_3, window_bounds = array<i64: 32, 4>}, {pipeline_mode = #tpu.pipeline_mode<synchronous>, transform_indices = @transform_4, window_bounds = array<i64: 1, 4>}, {transform_indices = @transform_5, window_bounds = array<i64: 8, 4>}]} {
    %c0 = arith.constant 0 : index
    %c0_0 = arith.constant 0 : index
    %0 = vector.load %arg1[%c0, %c0_0] : memref<8x2xf32, #tpu.memory_space<vmem>>, vector<8x2xf32>
    %c0_1 = arith.constant 0 : index
    %c0_2 = arith.constant 0 : index
    %1 = vector.load %arg2[%c0_1, %c0_2] : memref<2x32xf32, #tpu.memory_space<vmem>>, vector<2x32xf32>
    %2 = vector.extract_strided_slice %0 {offsets = [0, 0], sizes = [8, 1], strides = [1, 1]} : vector<8x2xf32> to vector<8x1xf32>
    %3 = vector.extract_strided_slice %1 {offsets = [0, 0], sizes = [1, 32], strides = [1, 1]} : vector<2x32xf32> to vector<1x32xf32>
    %4 = vector.broadcast %2 : vector<8x1xf32> to vector<8x32xf32>
    %5 = vector.broadcast %3 : vector<1x32xf32> to vector<8x32xf32>
    %6 = arith.mulf %4, %5 : vector<8x32xf32>
    %7 = vector.extract_strided_slice %0 {offsets = [0, 1], sizes = [8, 1], strides = [1, 1]} : vector<8x2xf32> to vector<8x1xf32>
    %8 = vector.extract_strided_slice %1 {offsets = [1, 0], sizes = [1, 32], strides = [1, 1]} : vector<2x32xf32> to vector<1x32xf32>
    %9 = vector.broadcast %7 : vector<8x1xf32> to vector<8x32xf32>
    %10 = vector.broadcast %8 : vector<1x32xf32> to vector<8x32xf32>
    %11 = arith.mulf %9, %10 : vector<8x32xf32>
    %12 = arith.addf %6, %11 : vector<8x32xf32>
    %c0_3 = arith.constant 0 : index
    %c0_4 = arith.constant 0 : index
    %13 = vector.load %arg3[%c0_3, %c0_4] : memref<1x32xf32, #tpu.memory_space<vmem>>, vector<1x32xf32>
    %14 = vector.broadcast %13 : vector<1x32xf32> to vector<8x32xf32>
    %15 = arith.addf %12, %14 : vector<8x32xf32>
    %cst = arith.constant 0.000000e+00 : f32
    %16 = vector.broadcast %cst : f32 to vector<8x32xf32>
    %17 = arith.cmpf ogt, %15, %16 : vector<8x32xf32>
    %cst_5 = arith.constant 0.00999999977 : f32
    %18 = vector.broadcast %cst_5 : f32 to vector<8x32xf32>
    %19 = arith.mulf %18, %15 : vector<8x32xf32>
    %20 = arith.select %17, %15, %19 : vector<8x32xi1>, vector<8x32xf32>
    %c0_6 = arith.constant 0 : index
    %c0_7 = arith.constant 0 : index
    %21 = vector.load %arg4[%c0_6, %c0_7] : memref<32x4xf32, #tpu.memory_space<vmem>>, vector<32x4xf32>
    %cst_8 = arith.constant dense<0.000000e+00> : vector<8x4xf32>
    %22 = tpu.matmul %20, %21, %cst_8 {dimension_numbers = #tpu.dot_dimension_numbers<[1], [0], [0], [1], [0, 0, 1, 1], [], []>} : vector<8x32xf32>, vector<32x4xf32>, vector<8x4xf32> -> vector<8x4xf32>
    %c0_9 = arith.constant 0 : index
    %c0_10 = arith.constant 0 : index
    %23 = vector.load %arg5[%c0_9, %c0_10] : memref<1x4xf32, #tpu.memory_space<vmem>>, vector<1x4xf32>
    %24 = vector.broadcast %23 : vector<1x4xf32> to vector<8x4xf32>
    %25 = arith.addf %22, %24 : vector<8x4xf32>
    %c0_11 = arith.constant 0 : index
    %c0_12 = arith.constant 0 : index
    %26 = vector.load %arg6[%c0_11, %c0_12] : memref<8x4xf32, #tpu.memory_space<vmem>>, vector<8x4xf32>
    tpu.vector_store %arg6[%c0_11, %c0_12], %25 {strides = array<i32>} : memref<8x4xf32, #tpu.memory_space<vmem>>, vector<8x4xf32>,
    return
  }
  func.func @transform_0(%arg0: i32) -> (i32, i32) {
    %c0_i32 = arith.constant 0 : i32
    %c0_i32_0 = arith.constant 0 : i32
    return %arg0, %c0_i32 : i32, i32
  }
  func.func @transform_1(%arg0: i32) -> (i32, i32) {
    %c0_i32 = arith.constant 0 : i32
    %c0_i32_0 = arith.constant 0 : i32
    %c0_i32_1 = arith.constant 0 : i32
    return %c0_i32, %c0_i32_0 : i32, i32
  }
  func.func @transform_2(%arg0: i32) -> (i32, i32) {
    %c0_i32 = arith.constant 0 : i32
    %c0_i32_0 = arith.constant 0 : i32
    %c0_i32_1 = arith.constant 0 : i32
    return %c0_i32, %c0_i32_0 : i32, i32
  }
  func.func @transform_3(%arg0: i32) -> (i32, i32) {
    %c0_i32 = arith.constant 0 : i32
    %c0_i32_0 = arith.constant 0 : i32
    %c0_i32_1 = arith.constant 0 : i32
    return %c0_i32, %c0_i32_0 : i32, i32
  }
  func.func @transform_4(%arg0: i32) -> (i32, i32) {
    %c0_i32 = arith.constant 0 : i32
    %c0_i32_0 = arith.constant 0 : i32
    %c0_i32_1 = arith.constant 0 : i32
    return %c0_i32, %c0_i32_0 : i32, i32
  }
  func.func @transform_5(%arg0: i32) -> (i32, i32) {
    %c0_i32 = arith.constant 0 : i32
    %c0_i32_0 = arith.constant 0 : i32
    return %arg0, %c0_i32 : i32, i32
  }
}

</mosaic_0001>

<bundles_post_ra>
// kernel: _encgm_call.1
= control target key start
LH: loop header
LB: loop body
LE: loop exit
PB: predicated region body
PF: predicated region fallthrough
CT: control target
= control target key end

     0   :  { %v176_v0 = vmov 0   ;;  %v177_v2 = vmov 1   ;;  %v178_v6 = vmov 0.0|0.0   ;;  %vm179_vm0 = vmmov 0   ;;  %s238_s0 = inlined_call_operand.vmem [shape: f32[8,2], index: 0, kind: input, shape index: {}]   ;;  %s239_s3 = inlined_call_operand.vmem [shape: f32[32,4], index: 3, kind: input, shape index: {}]   ;;  %s240_s1 = inlined_call_operand.vmem [shape: f32[2,32], index: 1, kind: input, shape index: {}]   ;;  %s241_s2 = inlined_call_operand.vmem [shape: f32[1,32], index: 2, kind: input, shape index: {}]   ;;  %s242_s4 = inlined_call_operand.vmem [shape: f32[1,4], index: 4, kind: input, shape index: {}]   ;;  %s243_s5 = inlined_call_operand.vmem [shape: f32[8,4], index: 5, kind: output, shape index: {}]  }
   0x1   :  { %174 = vset.pattern.permute.xlu0 %v176_v0  ;;  %v20_v1 = vld [vmem:[%s238_s0] sm:$0xff]  ;;  %v54_v4 = vld [vmem:[%s239_s3 + $0x8] sm:$0xff]  ;;  %163 = vmatprep.subr.bf16.mxu0 %v178_v6  ;;  %v55_v7 = vld [vmem:[%s239_s3 + $0x10] sm:$0xff]  ;;  %v180_v10 = vmov 0.0   ;;  %v27_v11 = vlaneseq  ;;  %vm64_vm2 = vcmask 261120   ;;  %vm138_vm3 = vcmask 31744  }
   0x2   :  { %24 = vperm.xlu0 %174, %v20_v1   ;;  %v53_v3 = vld [vmem:[%s239_s3] sm:$0xff]  ;;  %v56_v8 = vld [vmem:[%s239_s3 + $0x18] sm:$0xff]  ;;  %160 = vmatprep.mubr.msk.f32.mxu0 %vm179_vm0, %v180_v10 }
   0x3   :  { %v164_v5 = vpack.c.bf16 %v54_v4, %v53_v3  ;;  %v167_v9 = vpack.c.bf16 %v56_v8, %v55_v7  ;;  %v28_v12 = vshrl.u32 %v27_v11, 7  ;;  %v21_v15 = vld [vmem:[%s240_s1] sm:$0x3] }
   0x4   :  { %v144_v22 = vld [vmem:[%s241_s2] ss:$0 sm:$0xff] }
   0x5   :  { %165 = vmatpush3.bf16.msra.mxu0 %v164_v5  ;;  %v29_v13 = vsub.s32 0, %v28_v12  ;;  %v38_v14 = vsub.s32 1, %v28_v12  ;;  %v145_v27 = vld [vmem:[%s242_s4] ss:$0 sm:$0xff] }
   0x6   :  { %175 = vset.pattern.permute.xlu0 %v177_v2  ;;  %166 = vmatprep.subr.bf16.mxu0 %v178_v6 }
   0x7   :  { %33 = vperm.xlu0 %175, %v20_v1   ;;  %v30_v17 = vrot.slane %v21_v15, %v29_v13  ;;  %v39_v18 = vrot.slane %v21_v15, %v38_v14 }
   0x9   :  { %168 = vmatpush3.bf16.msra.mxu0 %v167_v9 }
  0x81   :  { %v25_v16 = vpop.permute.xlu0 %24 }
  0x82   :  { %v31_v20 = vmul.f32 %v30_v17, %v25_v16 }
  0x86   :  { %v34_v19 = vpop.permute.xlu0 %33 }
  0x87   :  { %v40_v21 = vmul.f32 %v39_v18, %v34_v19 }
  0x89   :  { %v41_v23 = vadd.f32 %v40_v21, %v31_v20 }
  0x8b   :  { %v49_v24 = vadd.f32 %v144_v22, %v41_v23 }
  0x8d   :  { %vm50_vm1 = vcmp.gt.f32.partialorder %v49_v24, 0.0  ;;  %v51_v25 = vmul.f32 0.01, %v49_v24 }
  0x8f   :  { %v52_v26 = vsel %vm50_vm1, %v49_v24, %v51_v25 }
  0x90   :  { %161 = vmatmul.mubr.msk.f32.vlgmr.msra.gmra.mrb[0].mxu0 %vm64_vm2, %v52_v26 }
 0x163   :  { %v134_v28 = vpop.f32.mrb[0].mxu0 }
 0x164   :  { %v135_v29 = vadd.f32 %v145_v27, %v134_v28  ;;  %v162_v30 = vpop.f32.mrb[1].mxu0 }
 0x166   :  { %139 = vst.msk [vmem:[%s243_s5] sm:$0xff] %vm138_vm3, %v135_v29 }

</bundles_post_ra>
